<compile_context>
chip_gen: v7x
topology: tpu7x:2x2x1
jax: 0.10.0
libtpu: 0.0.40
codegen_flags: <defaults>
</compile_context>

<pallas_src>
import functools

import jax
import jax.numpy as jnp
from jax.experimental import pallas as pl
from jax.experimental.pallas import tpu as pltpu


def hugetanh_kernel(x_ref,
                    w1_ref, b1_ref,
                    w2_ref, b2_ref,
                    w3_ref, b3_ref,
                    w4_ref, b4_ref,
                    o_ref):
    """Whole forward pass for one batch tile, entirely in VMEM.

    x_ref : [in_dim, TB]          (batch on lanes)
    wK    : [fan_out, fan_in]     (native PyTorch Linear layout)
    bK    : [fan_out, 1]
    o_ref : [out_dim, TB]
    """
    cdt = x_ref.dtype                       # matmul operand dtype (f32 or bf16)
    h = x_ref[...]

    for w_ref, b_ref in ((w1_ref, b1_ref), (w2_ref, b2_ref), (w3_ref, b3_ref)):
        z = jnp.dot(w_ref[...], h, preferred_element_type=jnp.float32) + b_ref[...]
        h = jnp.tanh(z).astype(cdt)         # tanh/bias in f32, chain in cdt

    z = jnp.dot(w4_ref[...], h, preferred_element_type=jnp.float32) + b4_ref[...]
    o_ref[...] = (7.0 * jnp.tanh(z)).astype(o_ref.dtype)


@functools.partial(jax.jit, static_argnames=("batch_tile", "compute_dtype"))
def hugetanh_forward(obs, params, batch_tile=512, compute_dtype=jnp.float32):
    """obs: [B, in_dim] float32.

    params: dict of (wK, bK) in PyTorch layout: wK [fan_out, fan_in], bK [fan_out].
    batch_tile: multiple of 128 (lane width); arbitrary B handled via padding.
    compute_dtype: operand dtype for the MXU (use jnp.bfloat16 on v6e/v7x for
    ~2x matmul throughput + halved x-stream bandwidth; keep f32 for exactness).
    """
    B, in_dim = obs.shape
    w1, b1 = params["w1"], params["b1"]
    w2, b2 = params["w2"], params["b2"]
    w3, b3 = params["w3"], params["b3"]
    w4, b4 = params["w4"], params["b4"]
    neurons = w1.shape[0]
    out_dim = w4.shape[0]

    # --- grid / padding: cdiv-based so big, perf-optimal tiles work for any B ---
    num_tiles = pl.cdiv(B, batch_tile)
    b_pad = num_tiles * batch_tile

    # Batch on the lane (last) dimension.
    obs_t = obs.T                                        # [in_dim, B]
    if b_pad != B:
        obs_t = jnp.pad(obs_t, ((0, 0), (0, b_pad - B)))

    # Matmul operands in compute_dtype; biases stay f32 for the f32 accumulate path.
    def cast_w(w):
        return w if compute_dtype == jnp.float32 else w.astype(compute_dtype)

    obs_t = cast_w(obs_t)
    w1c, w2c, w3c, w4c = cast_w(w1), cast_w(w2), cast_w(w3), cast_w(w4)
    b1c = b1.reshape(-1, 1).astype(jnp.float32)
    b2c = b2.reshape(-1, 1).astype(jnp.float32)
    b3c = b3.reshape(-1, 1).astype(jnp.float32)
    b4c = b4.reshape(-1, 1).astype(jnp.float32)

    # Weights/biases: constant block index 0 along the grid -> stay VMEM-resident,
    # no per-step re-DMA. Only the x tile and output tile stream.
    def resident(arr):
        return pl.BlockSpec(arr.shape, lambda i: (0, 0))

    in_specs = [
        pl.BlockSpec((in_dim, batch_tile), lambda i: (0, i)),   # x tile, lane-dense
        resident(w1c), resident(b1c),
        resident(w2c), resident(b2c),
        resident(w3c), resident(b3c),
        resident(w4c), resident(b4c),
    ]
    out_specs = pl.BlockSpec((out_dim, batch_tile), lambda i: (0, i))

    out_t = pl.pallas_call(
        hugetanh_kernel,
        out_shape=jax.ShapeDtypeStruct((out_dim, b_pad), jnp.float32),
        grid_spec=pltpu.PrefetchScalarGridSpec(
            num_scalar_prefetch=0,
            grid=(num_tiles,),
            in_specs=in_specs,
            out_specs=out_specs,
        ),
        compiler_params=pltpu.CompilerParams(
            dimension_semantics=("parallel",)),
    )(obs_t, w1c, b1c, w2c, b2c, w3c, b3c, w4c, b4c)

    # Crop padding and restore PyTorch's [B, out_dim] orientation (layout plumbing).
    return out_t[:, :B].T


def init_params(key, in_dim, out_dim, neurons):
    """Deterministic init mimicking nn.Linear (uniform +-1/sqrt(fan_in)).
    Weights in PyTorch layout [fan_out, fan_in]; biases [fan_out]."""
    dims = [(in_dim, neurons), (neurons, neurons), (neurons, neurons), (neurons, out_dim)]
    params = {}
    for idx, (fi, fo) in enumerate(dims, start=1):
        key, kw, kb = jax.random.split(key, 3)
        bound = 1.0 / jnp.sqrt(jnp.float32(fi))
        params[f"w{idx}"] = jax.random.uniform(kw, (fo, fi), jnp.float32, -bound, bound)
        params[f"b{idx}"] = jax.random.uniform(kb, (fo,), jnp.float32, -bound, bound)
    return params


def reference_forward(obs, params):
    a1 = jnp.tanh(obs @ params["w1"].T + params["b1"])
    a2 = jnp.tanh(a1 @ params["w2"].T + params["b2"])
    a3 = jnp.tanh(a2 @ params["w3"].T + params["b3"])
    return 7.0 * jnp.tanh(a3 @ params["w4"].T + params["b4"])


if __name__ == "__main__":
    key = jax.random.PRNGKey(0)
    in_dim, out_dim, neurons = 16, 4, 32
    batch = 200  # not a multiple of the tile -> exercises cdiv + padding

    key, kx = jax.random.split(key)
    obs = jax.random.normal(kx, (batch, in_dim), jnp.float32)
    params = init_params(key, in_dim, out_dim, neurons)

    # batch_tile=128 -> grid of 2 steps (pads 200 -> 256); keeps f32 so the
    # 1e-4 check holds on all generations. For large-B production use
    # batch_tile=512..2048 and compute_dtype=jnp.bfloat16 on v6e/v7x.
    out = hugetanh_forward(obs, params, batch_tile=128)
    out = jax.block_until_ready(out)

    ref = reference_forward(obs, params)
    assert out.shape == (batch, out_dim)
    assert jnp.max(jnp.abs(out - ref)) < 1e-4, "mismatch vs pure-JAX reference"

    print("KERNEL_OK")
</pallas_src>

<mosaic_0001>
module attributes {stable_mosaic.version = 11 : i64} {
  func.func @hugetanh_kernel(%arg0: i32, %arg1: memref<16x128xf32, #tpu.memory_space<vmem>>, %arg2: memref<32x16xf32, #tpu.memory_space<vmem>>, %arg3: memref<32x1xf32, #tpu.memory_space<vmem>>, %arg4: memref<32x32xf32, #tpu.memory_space<vmem>>, %arg5: memref<32x1xf32, #tpu.memory_space<vmem>>, %arg6: memref<32x32xf32, #tpu.memory_space<vmem>>, %arg7: memref<32x1xf32, #tpu.memory_space<vmem>>, %arg8: memref<4x32xf32, #tpu.memory_space<vmem>>, %arg9: memref<4x1xf32, #tpu.memory_space<vmem>>, %arg10: memref<4x128xf32, #tpu.memory_space<vmem>>) attributes {dimension_semantics = [#tpu.dimension_semantics<parallel>], iteration_bounds = array<i64: 2>, scalar_prefetch = 0 : i64, scratch_operands = 0 : i64, tpu.core_type = #tpu.core_type<tc>, window_params = [{transform_indices = @transform_0, window_bounds = array<i64: 16, 128>}, {pipeline_mode = #tpu.pipeline_mode<synchronous>, transform_indices = @transform_1, window_bounds = array<i64: 32, 16>}, {pipeline_mode = #tpu.pipeline_mode<synchronous>, transform_indices = @transform_2, window_bounds = array<i64: 32, 1>}, {pipeline_mode = #tpu.pipeline_mode<synchronous>, transform_indices = @transform_3, window_bounds = array<i64: 32, 32>}, {pipeline_mode = #tpu.pipeline_mode<synchronous>, transform_indices = @transform_4, window_bounds = array<i64: 32, 1>}, {pipeline_mode = #tpu.pipeline_mode<synchronous>, transform_indices = @transform_5, window_bounds = array<i64: 32, 32>}, {pipeline_mode = #tpu.pipeline_mode<synchronous>, transform_indices = @transform_6, window_bounds = array<i64: 32, 1>}, {pipeline_mode = #tpu.pipeline_mode<synchronous>, transform_indices = @transform_7, window_bounds = array<i64: 4, 32>}, {pipeline_mode = #tpu.pipeline_mode<synchronous>, transform_indices = @transform_8, window_bounds = array<i64: 4, 1>}, {transform_indices = @transform_9, window_bounds = array<i64: 4, 128>}]} {
    %c0 = arith.constant 0 : index
    %c0_0 = arith.constant 0 : index
    %0 = vector.load %arg1[%c0, %c0_0] : memref<16x128xf32, #tpu.memory_space<vmem>>, vector<16x128xf32>
    %c0_1 = arith.constant 0 : index
    %c0_2 = arith.constant 0 : index
    %1 = vector.load %arg2[%c0_1, %c0_2] : memref<32x16xf32, #tpu.memory_space<vmem>>, vector<32x16xf32>
    %cst = arith.constant dense<0.000000e+00> : vector<32x128xf32>
    %2 = tpu.matmul %1, %0, %cst {dimension_numbers = #tpu.dot_dimension_numbers<[1], [0], [0], [1], [0, 0, 1, 1], [], []>} : vector<32x16xf32>, vector<16x128xf32>, vector<32x128xf32> -> vector<32x128xf32>
    %c0_3 = arith.constant 0 : index
    %c0_4 = arith.constant 0 : index
    %3 = vector.load %arg3[%c0_3, %c0_4] : memref<32x1xf32, #tpu.memory_space<vmem>>, vector<32x1xf32>
    %4 = vector.broadcast %3 : vector<32x1xf32> to vector<32x128xf32>
    %5 = arith.addf %2, %4 : vector<32x128xf32>
    %6 = math.tanh %5 : vector<32x128xf32>
    %c0_5 = arith.constant 0 : index
    %c0_6 = arith.constant 0 : index
    %7 = vector.load %arg4[%c0_5, %c0_6] : memref<32x32xf32, #tpu.memory_space<vmem>>, vector<32x32xf32>
    %cst_7 = arith.constant dense<0.000000e+00> : vector<32x128xf32>
    %8 = tpu.matmul %7, %6, %cst_7 {dimension_numbers = #tpu.dot_dimension_numbers<[1], [0], [0], [1], [0, 0, 1, 1], [], []>} : vector<32x32xf32>, vector<32x128xf32>, vector<32x128xf32> -> vector<32x128xf32>
    %c0_8 = arith.constant 0 : index
    %c0_9 = arith.constant 0 : index
    %9 = vector.load %arg5[%c0_8, %c0_9] : memref<32x1xf32, #tpu.memory_space<vmem>>, vector<32x1xf32>
    %10 = vector.broadcast %9 : vector<32x1xf32> to vector<32x128xf32>
    %11 = arith.addf %8, %10 : vector<32x128xf32>
    %12 = math.tanh %11 : vector<32x128xf32>
    %c0_10 = arith.constant 0 : index
    %c0_11 = arith.constant 0 : index
    %13 = vector.load %arg6[%c0_10, %c0_11] : memref<32x32xf32, #tpu.memory_space<vmem>>, vector<32x32xf32>
    %cst_12 = arith.constant dense<0.000000e+00> : vector<32x128xf32>
    %14 = tpu.matmul %13, %12, %cst_12 {dimension_numbers = #tpu.dot_dimension_numbers<[1], [0], [0], [1], [0, 0, 1, 1], [], []>} : vector<32x32xf32>, vector<32x128xf32>, vector<32x128xf32> -> vector<32x128xf32>
    %c0_13 = arith.constant 0 : index
    %c0_14 = arith.constant 0 : index
    %15 = vector.load %arg7[%c0_13, %c0_14] : memref<32x1xf32, #tpu.memory_space<vmem>>, vector<32x1xf32>
    %16 = vector.broadcast %15 : vector<32x1xf32> to vector<32x128xf32>
    %17 = arith.addf %14, %16 : vector<32x128xf32>
    %18 = math.tanh %17 : vector<32x128xf32>
    %c0_15 = arith.constant 0 : index
    %c0_16 = arith.constant 0 : index
    %19 = vector.load %arg8[%c0_15, %c0_16] : memref<4x32xf32, #tpu.memory_space<vmem>>, vector<4x32xf32>
    %cst_17 = arith.constant dense<0.000000e+00> : vector<4x128xf32>
    %20 = tpu.matmul %19, %18, %cst_17 {dimension_numbers = #tpu.dot_dimension_numbers<[1], [0], [0], [1], [0, 0, 1, 1], [], []>} : vector<4x32xf32>, vector<32x128xf32>, vector<4x128xf32> -> vector<4x128xf32>
    %c0_18 = arith.constant 0 : index
    %c0_19 = arith.constant 0 : index
    %21 = vector.load %arg9[%c0_18, %c0_19] : memref<4x1xf32, #tpu.memory_space<vmem>>, vector<4x1xf32>
    %22 = vector.broadcast %21 : vector<4x1xf32> to vector<4x128xf32>
    %23 = arith.addf %20, %22 : vector<4x128xf32>
    %24 = math.tanh %23 : vector<4x128xf32>
    %cst_20 = arith.constant 7.000000e+00 : f32
    %25 = vector.broadcast %cst_20 : f32 to vector<4x128xf32>
    %26 = arith.mulf %25, %24 : vector<4x128xf32>
    %c0_21 = arith.constant 0 : index
    %c0_22 = arith.constant 0 : index
    %27 = vector.load %arg10[%c0_21, %c0_22] : memref<4x128xf32, #tpu.memory_space<vmem>>, vector<4x128xf32>
    tpu.vector_store %arg10[%c0_21, %c0_22], %26 {strides = array<i32>} : memref<4x128xf32, #tpu.memory_space<vmem>>, vector<4x128xf32>,
    return
  }
  func.func @transform_0(%arg0: i32) -> (i32, i32) {
    %c0_i32 = arith.constant 0 : i32
    %c0_i32_0 = arith.constant 0 : i32
    return %c0_i32, %arg0 : i32, i32
  }
  func.func @transform_1(%arg0: i32) -> (i32, i32) {
    %c0_i32 = arith.constant 0 : i32
    %c0_i32_0 = arith.constant 0 : i32
    %c0_i32_1 = arith.constant 0 : i32
    return %c0_i32, %c0_i32_0 : i32, i32
  }
  func.func @transform_2(%arg0: i32) -> (i32, i32) {
    %c0_i32 = arith.constant 0 : i32
    %c0_i32_0 = arith.constant 0 : i32
    %c0_i32_1 = arith.constant 0 : i32
    return %c0_i32, %c0_i32_0 : i32, i32
  }
  func.func @transform_3(%arg0: i32) -> (i32, i32) {
    %c0_i32 = arith.constant 0 : i32
    %c0_i32_0 = arith.constant 0 : i32
    %c0_i32_1 = arith.constant 0 : i32
    return %c0_i32, %c0_i32_0 : i32, i32
  }
  func.func @transform_4(%arg0: i32) -> (i32, i32) {
    %c0_i32 = arith.constant 0 : i32
    %c0_i32_0 = arith.constant 0 : i32
    %c0_i32_1 = arith.constant 0 : i32
    return %c0_i32, %c0_i32_0 : i32, i32
  }
  func.func @transform_5(%arg0: i32) -> (i32, i32) {
    %c0_i32 = arith.constant 0 : i32
    %c0_i32_0 = arith.constant 0 : i32
    %c0_i32_1 = arith.constant 0 : i32
    return %c0_i32, %c0_i32_0 : i32, i32
  }
  func.func @transform_6(%arg0: i32) -> (i32, i32) {
    %c0_i32 = arith.constant 0 : i32
    %c0_i32_0 = arith.constant 0 : i32
    %c0_i32_1 = arith.constant 0 : i32
    return %c0_i32, %c0_i32_0 : i32, i32
  }
  func.func @transform_7(%arg0: i32) -> (i32, i32) {
    %c0_i32 = arith.constant 0 : i32
    %c0_i32_0 = arith.constant 0 : i32
    %c0_i32_1 = arith.constant 0 : i32
    return %c0_i32, %c0_i32_0 : i32, i32
  }
  func.func @transform_8(%arg0: i32) -> (i32, i32) {
    %c0_i32 = arith.constant 0 : i32
    %c0_i32_0 = arith.constant 0 : i32
    %c0_i32_1 = arith.constant 0 : i32
    return %c0_i32, %c0_i32_0 : i32, i32
  }
  func.func @transform_9(%arg0: i32) -> (i32, i32) {
    %c0_i32 = arith.constant 0 : i32
    %c0_i32_0 = arith.constant 0 : i32
    return %c0_i32, %arg0 : i32, i32
  }
}

</mosaic_0001>

<bundles_post_ra>
// kernel: hugetanh_forward.1
= control target key start
LH: loop header
LB: loop body
LE: loop exit
PB: predicated region body
PF: predicated region fallthrough
CT: control target
= control target key end

     0   :  { %s1162_s30 = smov 0   ;;  %s1164_s10 = smov 0   ;;  %s1307_s0 = inlined_call_operand.vmem [shape: f32[16,256], index: 0, kind: input, shape index: {}]   ;;  %s1308_s1 = inlined_call_operand.vmem [shape: f32[32,16], index: 1, kind: input, shape index: {}]   ;;  %s1309_s2 = inlined_call_operand.vmem [shape: f32[32,1], index: 2, kind: input, shape index: {}]   ;;  %s1310_s3 = inlined_call_operand.vmem [shape: f32[32,32], index: 3, kind: input, shape index: {}]   ;;  %s1311_s4 = inlined_call_operand.vmem [shape: f32[32,1], index: 4, kind: input, shape index: {}]   ;;  %s1312_s5 = inlined_call_operand.vmem [shape: f32[32,32], index: 5, kind: input, shape index: {}]   ;;  %s1313_s6 = inlined_call_operand.vmem [shape: f32[32,1], index: 6, kind: input, shape index: {}]   ;;  %s1314_s7 = inlined_call_operand.vmem [shape: f32[4,32], index: 7, kind: input, shape index: {}]   ;;  %s1315_s8 = inlined_call_operand.vmem [shape: f32[4,1], index: 8, kind: input, shape index: {}]   ;;  %s1316_s9 = inlined_call_operand.vmem [shape: f32[4,256], index: 9, kind: output, shape index: {}]  }
   0x1   :  { %s1166_s11 = smov 0  }
   0x2 LB: > { %s902_s12 = sadd.s32 4294967295, %s1106_s11   ;;  %s1179_s13 = sadd.s32 1, %s1106_s11   ;;  %s1106_s11 = sphi %s1166_s11, %s1319_s11   ;;  %s1102_s10 = sphi %s1164_s10, %s1318_s10   ;;  %s1098_s30 = sphi %s1162_s30, %s1317_s30  }
   0x3   : > { %s23_s14 = ssub.s32 %s1106_s11, %s1179_s13  ;;  %s26_s15 = sadd.s32 1, %s1102_s10 }
   0x4   : > { %p24_p0 = scmp.eq.s32.totalorder %s23_s14, 0  ;;  %p33_p1 = scmp.ne.s32.totalorder %s1102_s10, %s1098_s30 }
   0x5   : > { %p34_p2 = scmp.eq.s32.totalorder %s1106_s11, 0  ;;  %p905_p4 = scmp.ge.s32.totalorder %s1106_s11, 2 }
   0x6   : > { %s1188_s16 = scalar_select %p24_p0, %s1102_s10, %s26_s15  }
   0x7   : > { %p35_p3 = por %p34_p2, %p33_p1  ;;  %277 = sbr.rel (%p905_p4) target bundleno = 21 (0x15), region = 48 }
   0xe   : > { %280 = sbr.rel (!%p35_p3) target bundleno = 21 (0x15), region = 52  ;;  %s282_s17 = sand.u32 (%p35_p3), 1, %s1102_s10  }
   0xf   : > { %s907_s18 = sshll.u32 (%p35_p3), %s1106_s11, 3  ;;  %s906_s19 = sshll.u32 (%p35_p3), %s282_s17, 4 }
  0x10   : > { %s286_s22 = scalar_lea.vmem (%p35_p3), %s1307_s0, %s907_s18  ;;  %s284_s23 = scalar_lea.vmem (%p35_p3), [#allocation2], %s906_s19 }
  0x11   : > { %v316_v0 = vld [vmem:[%s286_s22] sm:$0xff] (%p35_p3)  ;;  %v318_v1 = vld [vmem:[%s286_s22 + $0x10] sm:$0xff] (%p35_p3) }
  0x12   : > { %317 = vst [vmem:[%s284_s23] sm:$0xff] (%p35_p3), %v316_v0  ;;  %319 = vst [vmem:[%s284_s23 + $0x8] sm:$0xff] (%p35_p3), %v318_v1 }
  0x15 PF: > { %p908_p5 = scmp.ge.s32.totalorder %s1106_s11, 1  ;;  %p324_p6 = scmp.lt.s32.totalorder %s1106_s11, 3 }
  0x17   : > { %p325_p7 = pnand %p908_p5, %p324_p6 }
  0x18   : > { %s331_s24 = sand.u32 (!%p325_p7), 1, %s1098_s30   ;;  %v371_v2 = vld [vmem:[%s1308_s1] sm:$0xff] (!%p325_p7)  ;;  %vm399_vm0 = vcmask (!%p325_p7), 130048   ;;  %v1108_v3 = vmov (!%p325_p7), 0   ;;  %v377_v5 = vld [vmem:[%s1309_s2 + $0x10] sm:$0xff] (!%p325_p7)  ;;  %v376_v8 = vld [vmem:[%s1309_s2 + $0x8] sm:$0xff] (!%p325_p7) }
  0x19   : > { %328 = sbr.rel (%p325_p7) target bundleno = 969 (0x3c9), region = 90  ;;  %s909_s27 = sshll.u32 (!%p325_p7), %s331_s24, 4  ;;  %957 = vmatprep.mubr.msk.f32.mxu0 (!%p325_p7), %vm399_vm0, %v371_v2  ;;  %1056 = vset.pattern.permute.xlu0 (!%p325_p7), %v1108_v3  ;;  %v375_v4 = vld [vmem:[%s1309_s2] sm:$0xff] (!%p325_p7)  ;;  %v378_v10 = vld [vmem:[%s1309_s2 + $0x18] sm:$0xff] (!%p325_p7)  ;;  %v372_v11 = vld [vmem:[%s1308_s1 + $0x8] sm:$0xff] (!%p325_p7)  ;;  %vm529_vm1 = vcmask (!%p325_p7), 261120  }
  0x1a   : > { %381 = vperm.xlu0 (!%p325_p7), %1056, %v375_v4   ;;  %1057 = vset.pattern.permute.xlu1 (!%p325_p7), %v1108_v3  ;;  %s333_s30 = scalar_lea.vmem (!%p325_p7), [#allocation2], %s909_s27  ;;  %v505_v12 = vld [vmem:[%s1311_s4] sm:$0xff] (!%p325_p7)  ;;  %v373_v13 = vld [vmem:[%s1308_s1 + $0x10] sm:$0xff] (!%p325_p7)  ;;  %v506_v14 = vld [vmem:[%s1311_s4 + $0x8] sm:$0xff] (!%p325_p7)  ;;  %v1109_v3 = vmov (!%p325_p7), 0.0|0.0   ;;  %vm1110_vm2 = vmmov (!%p325_p7), 0  }
  0x1b   : > { %v369_v6 = vld [vmem:[%s333_s30] sm:$0xff] (!%p325_p7)  ;;  %v370_v7 = vld [vmem:[%s333_s30 + $0x8] sm:$0xff] (!%p325_p7)  ;;  %391 = vperm.xlu1 (!%p325_p7), %1057, %v377_v5   ;;  %v1111_v4 = vmov (!%p325_p7), 0.0   ;;  %p365_p8 = scmp.lt.s32.totalorder (!%p325_p7), %s902_s12, 1 }
  0x1c   : > { %v1002_v9 = vpack.c.bf16 (!%p325_p7), %v370_v7, %v369_v6  ;;  %v374_v15 = vld [vmem:[%s1308_s1 + $0x18] sm:$0xff] (!%p325_p7)  ;;  %v507_v16 = vld [vmem:[%s1311_s4 + $0x10] sm:$0xff] (!%p325_p7)  ;;  %v635_v18 = vld [vmem:[%s1313_s6] sm:$0xff] (!%p325_p7) }
  0x1d   : > { %v508_v17 = vld [vmem:[%s1311_s4 + $0x18] sm:$0xff] (!%p325_p7)  ;;  %v636_v19 = vld [vmem:[%s1313_s6 + $0x8] sm:$0xff] (!%p325_p7)  ;;  %v637_v20 = vld [vmem:[%s1313_s6 + $0x10] sm:$0xff] (!%p325_p7) }
  0x1e   : > { %1003 = vmatprep.subr.bf16.mxu0 (!%p325_p7), %v1002_v9  ;;  %386 = vperm.xlu0 (!%p325_p7), %1056, %v376_v8   ;;  %v638_v21 = vld [vmem:[%s1313_s6 + $0x18] sm:$0xff] (!%p325_p7)  ;;  %v761_v22 = vld [vmem:[%s1315_s8] sm:$0xf] (!%p325_p7)  ;;  %v502_v42 = vld [vmem:[%s1310_s3 + $0x8] sm:$0xff] (!%p325_p7) }
  0x1f   : > { %1005 = vmatpush3.bf16.msra.mxu0 (!%p325_p7), %v1002_v9  ;;  %396 = vperm.xlu1 (!%p325_p7), %1057, %v378_v10   ;;  %v501_v23 = vld [vmem:[%s1310_s3] sm:$0xff] (!%p325_p7)  ;;  %v503_v43 = vld [vmem:[%s1310_s3 + $0x10] sm:$0xff] (!%p325_p7)  ;;  %v504_v44 = vld [vmem:[%s1310_s3 + $0x18] sm:$0xff] (!%p325_p7) }
  0x20   : > { %971 = vmatprep.mubr.msk.f32.mxu1 %vm529_vm1, %v501_v23  ;;  %v631_v45 = vld [vmem:[%s1312_s5] sm:$0xff]  ;;  %v632_v0 = vld [vmem:[%s1312_s5 + $0x8] sm:$0xff]  ;;  %v633_v1 = vld [vmem:[%s1312_s5 + $0x10] sm:$0xff]  ;;  %s1321_s12 = smov (!%p365_p8, %s902_s12), 1 }
  0x21   : > { %v634_v2 = vld [vmem:[%s1312_s5 + $0x18] sm:$0xff]  ;;  %v760_v23 = vld [vmem:[%s1314_s7] sm:$0xf]  ;;  %s910_s15 = sshll.u32 %s1321_s12, 2 }
  0x22   : > { %958 = vmatmul.mubr.msk.f32.vlgmr.msra.gmra.mrb[0].mxu0 %vm399_vm0, %v372_v11  ;;  %511 = vperm.xlu0 %1056, %v505_v12   ;;  %s368_s18 = scalar_lea.vmem %s1316_s9, %s910_s15 }
  0x23   : > { %960 = vmatprep.mubr.msk.f32.mxu0 %vm399_vm0, %v373_v13  ;;  %516 = vperm.xlu1 %1057, %v506_v14  }
  0x26   : > { %961 = vmatmul.mubr.msk.f32.gmra.mrb[2].mxu0 %vm399_vm0, %v374_v15  ;;  %521 = vperm.xlu0 %1056, %v507_v16  }
  0x27   : > { %526 = vperm.xlu1 %1057, %v508_v17   ;;  %985 = vmatprep.mubr.msk.f32.mxu0 %vm529_vm1, %v631_v45 }
  0x2a   : > { %641 = vperm.xlu0 %1056, %v635_v18  }
  0x2b   : > { %646 = vperm.xlu1 %1057, %v636_v19  }
  0x2e   : > { %651 = vperm.xlu0 %1056, %v637_v20  }
  0x2f   : > { %656 = vperm.xlu1 %1057, %v638_v21  }
  0x32   : > { %764 = vperm.xlu0 %1056, %v761_v22  }
  0x99   : > { %v382_v24 = vpop.permute.xlu0 %381 }
  0x9a   : > { %v392_v25 = vpop.permute.xlu1 %391 }
  0x9d   : > { %v387_v26 = vpop.permute.xlu0 %386 }
  0x9e   : > { %v397_v31 = vpop.permute.xlu1 %396 }
  0xa1   : > { %v512_v47 = vpop.permute.xlu0 %511 }
  0xa2   : > { %v517_v46 = vpop.permute.xlu1 %516 }
  0xa5   : > { %v522_v54 = vpop.permute.xlu0 %521 }
  0xa6   : > { %v527_v52 = vpop.permute.xlu1 %526 }
  0xa9   : > { %v642_v6 = vpop.permute.xlu0 %641 }
  0xaa   : > { %v647_v5 = vpop.permute.xlu1 %646 }
  0xad   : > { %v652_v13 = vpop.permute.xlu0 %651 }
  0xae   : > { %v657_v11 = vpop.permute.xlu1 %656 }
  0xf5   : > { %v959_v27 = vpop.f32.mrb[0].mxu0 }
  0xf6   : > { %v484_v28 = vadd.f32 %v959_v27, %v387_v26  ;;  %v478_v29 = vpop.f32.mrb[1].mxu0 }
  0xf7   : > { %v479_v30 = vadd.f32 %v478_v29, %v382_v24  ;;  %v765_v24 = vpop.permute.xlu0 %764 }
  0xf8   : > { %1058 = vtanh.f32 %v484_v28 }
  0xf9   : > { %1060 = vtanh.f32 %v479_v30  ;;  %v962_v32 = vpop.f32.mrb[2].mxu0 }
  0xfa   : > { %v494_v33 = vadd.f32 %v962_v32, %v397_v31  ;;  %v488_v34 = vpop.f32.mrb[3].mxu0 }
  0xfb   : > { %v489_v35 = vadd.f32 %v488_v34, %v392_v25 }
  0xfc   : > { %1062 = vtanh.f32 %v494_v33 }
  0xfd   : > { %1064 = vtanh.f32 %v489_v35 }
 0x102   : > { %v1059_v36 = vpop.eup %1058 }
 0x103   : > { %v1061_v37 = vpop.eup %1060 }
 0x104   : > { %v1006_v38 = vpack.c.bf16 %v1059_v36, %v1061_v37 }
 0x106   : > { %v1063_v39 = vpop.eup %1062  ;;  %1007 = vmatprep.subr.bf16.mxu1 %v1006_v38 }
 0x107   : > { %v1065_v40 = vpop.eup %1064  ;;  %1009 = vmatpush3.bf16.msra.mxu1 %v1006_v38 }
 0x108   : > { %v1010_v41 = vpack.c.bf16 %v1063_v39, %v1065_v40 }
 0x10a   : > { %1011 = vmatprep.subr.bf16.mxu1 %v1010_v41 }
 0x10b   : > { %1013 = vmatpush3.bf16.msra.mxu1 %v1010_v41 }
 0x10c   : > { %1022 = vmatprep.subr.bf16.mxu1 %v1109_v3 }
 0x10e   : > { %972 = vmatmul.mubr.msk.f32.vlgmr.msra.gmra.mrb[0].mxu1 %vm529_vm1, %v502_v42 }
 0x10f   : > { %974 = vmatprep.mubr.msk.f32.mxu1 %vm529_vm1, %v503_v43 }
 0x112   : > { %975 = vmatmul.mubr.msk.f32.gmra.mrb[2].mxu1 %vm529_vm1, %v504_v44 }
 0x113   : > { %999 = vmatprep.mubr.msk.f32.mxu1 %vm1110_vm2, %v1111_v4 }
 0x1e1   : > { %v973_v48 = vpop.f32.mrb[0].mxu1 }
 0x1e2   : > { %v614_v49 = vadd.f32 %v973_v48, %v517_v46  ;;  %v608_v50 = vpop.f32.mrb[1].mxu1 }
 0x1e3   : > { %v609_v51 = vadd.f32 %v608_v50, %v512_v47 }
 0x1e4   : > { %1066 = vtanh.f32 %v614_v49 }
 0x1e5   : > { %1068 = vtanh.f32 %v609_v51  ;;  %v976_v53 = vpop.f32.mrb[2].mxu1 }
 0x1e6   : > { %v624_v55 = vadd.f32 %v976_v53, %v527_v52  ;;  %v618_v56 = vpop.f32.mrb[3].mxu1 }
 0x1e7   : > { %v619_v57 = vadd.f32 %v618_v56, %v522_v54 }
 0x1e8   : > { %1070 = vtanh.f32 %v624_v55 }
 0x1e9   : > { %1072 = vtanh.f32 %v619_v57 }
 0x1ee   : > { %v1067_v58 = vpop.eup %1066 }
 0x1ef   : > { %v1069_v59 = vpop.eup %1068 }
 0x1f0   : > { %v1014_v60 = vpack.c.bf16 %v1067_v58, %v1069_v59 }
 0x1f2   : > { %v1071_v61 = vpop.eup %1070  ;;  %1015 = vmatprep.subr.bf16.mxu0 %v1014_v60 }
 0x1f3   : > { %v1073_v62 = vpop.eup %1072  ;;  %1017 = vmatpush3.bf16.msra.mxu0 %v1014_v60 }
 0x1f4   : > { %v1018_v63 = vpack.c.bf16 %v1071_v61, %v1073_v62 }
 0x1f6   : > { %1019 = vmatprep.subr.bf16.mxu0 %v1018_v63 }
 0x1f7   : > { %1021 = vmatpush3.bf16.msra.mxu0 %v1018_v63 }
 0x1fa   : > { %986 = vmatmul.mubr.msk.f32.vlgmr.msra.gmra.mrb[4].mxu0 %vm529_vm1, %v632_v0 }
 0x1fb   : > { %988 = vmatprep.mubr.msk.f32.mxu0 %vm529_vm1, %v633_v1 }
 0x1fe   : > { %989 = vmatmul.mubr.msk.f32.gmra.mrb[6].mxu0 %vm529_vm1, %v634_v2 }
 0x2cd   : > { %v987_v7 = vpop.f32.mrb[4].mxu0 }
 0x2ce   : > { %v743_v8 = vadd.f32 %v987_v7, %v647_v5  ;;  %v737_v9 = vpop.f32.mrb[5].mxu0 }
 0x2cf   : > { %v738_v10 = vadd.f32 %v737_v9, %v642_v6 }
 0x2d0   : > { %1074 = vtanh.f32 %v743_v8 }
 0x2d1   : > { %1076 = vtanh.f32 %v738_v10  ;;  %v990_v12 = vpop.f32.mrb[6].mxu0 }
 0x2d2   : > { %v753_v14 = vadd.f32 %v990_v12, %v657_v11  ;;  %v747_v15 = vpop.f32.mrb[7].mxu0 }
 0x2d3   : > { %v748_v16 = vadd.f32 %v747_v15, %v652_v13 }
 0x2d4   : > { %1078 = vtanh.f32 %v753_v14 }
 0x2d5   : > { %1080 = vtanh.f32 %v748_v16 }
 0x2da   : > { %v1075_v17 = vpop.eup %1074 }
 0x2db   : > { %v1077_v18 = vpop.eup %1076 }
 0x2dc   : > { %v1023_v19 = vpack.c.bf16 %v1075_v17, %v1077_v18 }
 0x2de   : > { %v1079_v20 = vpop.eup %1078  ;;  %1024 = vmatpush3.bf16.msra.mxu1 %v1023_v19 }
 0x2df   : > { %v1081_v21 = vpop.eup %1080  ;;  %1025 = vmatprep.subr.bf16.mxu1 %v1109_v3 }
 0x2e0   : > { %v1026_v22 = vpack.c.bf16 %v1079_v20, %v1081_v21 }
 0x2e2   : > { %1027 = vmatpush3.bf16.msra.mxu1 %v1026_v22 }
 0x2e5   : > { %1000 = vmatmul.mubr.msk.f32.vlgmr.msra.gmra.mrb[4].mxu1 %vm529_vm1, %v760_v23 }
 0x3b8   : > { %v836_v25 = vpop.f32.mrb[4].mxu1 }
 0x3b9   : > { %v837_v26 = vadd.f32 %v836_v25, %v765_v24  ;;  %v1001_v27 = vpop.f32.mrb[5].mxu1 }
 0x3bb   : > { %1082 = vtanh.f32 %v837_v26 }
 0x3c5   : > { %v1083_v28 = vpop.eup %1082 }
 0x3c6   : > { %v841_v29 = vmul.f32 7.0, %v1083_v28 }
 0x3c8   : > { %842 = vst [vmem:[%s368_s18] sm:$0xf] %v841_v29 }
 0x3c9 PF: > { %p16_p9 = scmp.ge.s32.totalorder %s1179_s13, 4   ;;  %s1317_s30 = smov %s1102_s10 }
 0x3ca   : > { %s1318_s10 = smov %s1188_s16  ;;  %s1319_s11 = smov %s1179_s13 }
 0x3cb   :  { %18 = sbr.rel (!%p16_p9) target bundleno = 2 (0x2), region = 129 }

</bundles_post_ra>
